<compile_context>
chip_gen: v7x
topology: tpu7x:2x2x1
jax: 0.10.0
libtpu: 0.0.40
codegen_flags: <defaults>
</compile_context>

<pallas_src>
import jax
import jax.numpy as jnp
from jax.experimental import pallas as pl
from jax.experimental.pallas import tpu as pltpu

_LANE = 128


def _softmax_channels(x):
    # Softmax over axis 1 (channels / sublanes) of an (Nb, C, t) tile.
    # Reductions are sublane-axis -> XLU; exp -> EUP; exact reciprocal is one
    # divide per column (not per element) so EUP load stays minimal.
    m = jnp.max(x, axis=1, keepdims=True)
    e = jnp.exp(x - m)
    inv = 1.0 / jnp.sum(e, axis=1, keepdims=True)
    return e * inv


def _refine_kernel(pred_ref, prior_ref, wb_ref, out_ref):
    # pred_ref  : (Nb, C, t)   channel-major tile of pred
    # prior_ref : (Nb, 2, t)   channel-major tile of prior
    # wb_ref    : (C, 3)       merged 1x1-conv params: columns = (w0, w1, bias)
    pred = pred_ref[...].astype(jnp.float32)
    prior = prior_ref[...].astype(jnp.float32)
    wb = wb_ref[...].astype(jnp.float32)

    w0 = wb[:, 0:1][None]   # (1, C, 1)
    w1 = wb[:, 1:2][None]
    b = wb[:, 2:3][None]

    # 1x1 conv with 2 input channels: two broadcast multiply-adds on the VPU.
    logits = w0 * prior[:, 0:1, :] + w1 * prior[:, 1:2, :] + b   # (Nb, C, t)

    x = pred + _softmax_channels(logits)
    out_ref[...] = _softmax_channels(x).astype(out_ref.dtype)


def _pick_tiles(N, C, HW, itemsize, t_hw):
    """Pick (Nb, t): batch rows per block and spatial lanes per block."""
    if HW <= t_hw:
        t = HW
    else:
        t = max(_LANE, (min(t_hw, HW) // _LANE) * _LANE)
        # Keep enough total grid steps for megacore sharding + pipeline ramp
        # (v7x: 2 TensorCores), without dropping below 4096-lane tiles.
        while N * pl.cdiv(HW, t) < 8 and t > 32 * _LANE:
            t = max(32 * _LANE, ((t // 2) // _LANE) * _LANE)

    if t == HW:
        # Small spatial extent: pack batch rows into one block so pred/out
        # blocks approach ~1.5 MiB (double-buffered total ~9 MiB, safe under
        # v5e's 16 MiB scoped-VMEM default).  Nb must divide N so there is no
        # ragged tail along the batch axis.
        target_bytes = 3 << 19   # ~1.5 MiB
        nb = max(1, min(N, target_bytes // max(1, C * t * itemsize)))
        while N % nb:
            nb -= 1
    else:
        nb = 1
    return nb, t


def spatial_refine(pred, prior, weight, bias, *, t_hw=16384):
    """pred: (N, C, H, W), prior: (N, 2, H, W), weight: (C, 2, 1, 1), bias: (C,)."""
    N, C, H, W = pred.shape
    Cin = prior.shape[1]
    assert Cin == 2, "xy_only=True path expects a 2-channel prior"
    HW = H * W

    # Free (no-copy) channel-major reshapes; no NHWC transposes anywhere.
    pred_r = pred.reshape(N, C, HW)
    prior_r = prior.reshape(N, Cin, HW)
    # Merge the 1x1-conv weight and bias into one (C, 3) operand.
    wb = jnp.concatenate(
        [weight.reshape(C, Cin).astype(jnp.float32),
         bias.reshape(C, 1).astype(jnp.float32)], axis=1)

    nb, t = _pick_tiles(N, C, HW, pred.dtype.itemsize, t_hw)
    grid = (N // nb, pl.cdiv(HW, t))

    out_r = pl.pallas_call(
        _refine_kernel,
        out_shape=jax.ShapeDtypeStruct((N, C, HW), pred.dtype),
        grid_spec=pltpu.PrefetchScalarGridSpec(
            num_scalar_prefetch=0,
            grid=grid,
            in_specs=[
                pl.BlockSpec((nb, C, t), lambda i, j: (i, 0, j)),
                pl.BlockSpec((nb, Cin, t), lambda i, j: (i, 0, j)),
                pl.BlockSpec((C, Cin + 1), lambda i, j: (0, 0)),
            ],
            out_specs=pl.BlockSpec((nb, C, t), lambda i, j: (i, 0, j)),
        ),
        compiler_params=pltpu.CompilerParams(
            dimension_semantics=("parallel", "parallel")
        ),
    )(pred_r, prior_r, wb)

    return out_r.reshape(N, C, H, W)


def _reference(pred, prior, weight, bias):
    # Pure-JAX reference of the PyTorch forward (xy_only=True).
    C, Cin = weight.shape[0], weight.shape[1]
    w = weight.reshape(C, Cin)
    logits = jnp.einsum("nihw,ci->nchw", prior, w) + bias[None, :, None, None]
    x = pred + jax.nn.softmax(logits, axis=1)
    return jax.nn.softmax(x, axis=1)


if __name__ == "__main__":
    num_class = 19
    N, H, W = 2, 16, 16

    key = jax.random.PRNGKey(0)
    k_pred, k_prior, k_w, k_b = jax.random.split(key, 4)

    pred = jax.random.normal(k_pred, (N, num_class, H, W), dtype=jnp.float32)
    prior = jax.random.normal(k_prior, (N, 2, H, W), dtype=jnp.float32)

    # Conv2d(2, num_class, 1): weight (C, 2, 1, 1), bias (C,)
    fan_in = 2 * 1 * 1
    bound = 1.0 / (fan_in ** 0.5)
    weight = jax.random.uniform(k_w, (num_class, 2, 1, 1),
                                minval=-bound, maxval=bound, dtype=jnp.float32)
    bias = jax.random.uniform(k_b, (num_class,),
                              minval=-bound, maxval=bound, dtype=jnp.float32)

    out = spatial_refine(pred, prior, weight, bias)
    out = jax.block_until_ready(out)

    ref = _reference(pred, prior, weight, bias)
    assert out.shape == (N, num_class, H, W)
    assert jnp.allclose(out, ref, atol=1e-5, rtol=1e-5), "mismatch vs reference"

    print("KERNEL_OK")
</pallas_src>

<mosaic_0001>
module attributes {stable_mosaic.version = 11 : i64} {
  func.func @_refine_kernel(%arg0: i32, %arg1: i32, %arg2: memref<2x19x256xf32, #tpu.memory_space<vmem>>, %arg3: memref<2x2x256xf32, #tpu.memory_space<vmem>>, %arg4: memref<19x3xf32, #tpu.memory_space<vmem>>, %arg5: memref<2x19x256xf32, #tpu.memory_space<vmem>>) attributes {dimension_semantics = [#tpu.dimension_semantics<parallel>, #tpu.dimension_semantics<parallel>], iteration_bounds = array<i64: 1, 1>, scalar_prefetch = 0 : i64, scratch_operands = 0 : i64, tpu.core_type = #tpu.core_type<tc>, window_params = [{transform_indices = @transform_0, window_bounds = array<i64: 2, 19, 256>}, {transform_indices = @transform_1, window_bounds = array<i64: 2, 2, 256>}, {pipeline_mode = #tpu.pipeline_mode<synchronous>, transform_indices = @transform_2, window_bounds = array<i64: 19, 3>}, {transform_indices = @transform_3, window_bounds = array<i64: 2, 19, 256>}]} {
    %c0 = arith.constant 0 : index
    %c0_0 = arith.constant 0 : index
    %c0_1 = arith.constant 0 : index
    %0 = vector.load %arg2[%c0, %c0_0, %c0_1] : memref<2x19x256xf32, #tpu.memory_space<vmem>>, vector<2x19x256xf32>
    %c0_2 = arith.constant 0 : index
    %c0_3 = arith.constant 0 : index
    %c0_4 = arith.constant 0 : index
    %1 = vector.load %arg3[%c0_2, %c0_3, %c0_4] : memref<2x2x256xf32, #tpu.memory_space<vmem>>, vector<2x2x256xf32>
    %c0_5 = arith.constant 0 : index
    %c0_6 = arith.constant 0 : index
    %2 = vector.load %arg4[%c0_5, %c0_6] : memref<19x3xf32, #tpu.memory_space<vmem>>, vector<19x3xf32>
    %3 = vector.extract_strided_slice %2 {offsets = [0, 0], sizes = [19, 1], strides = [1, 1]} : vector<19x3xf32> to vector<19x1xf32>
    %4 = vector.shape_cast %3 : vector<19x1xf32> to vector<1x19x1xf32>
    %5 = vector.extract_strided_slice %2 {offsets = [0, 1], sizes = [19, 1], strides = [1, 1]} : vector<19x3xf32> to vector<19x1xf32>
    %6 = vector.shape_cast %5 : vector<19x1xf32> to vector<1x19x1xf32>
    %7 = vector.extract_strided_slice %2 {offsets = [0, 2], sizes = [19, 1], strides = [1, 1]} : vector<19x3xf32> to vector<19x1xf32>
    %8 = vector.shape_cast %7 : vector<19x1xf32> to vector<1x19x1xf32>
    %9 = vector.extract_strided_slice %1 {offsets = [0, 0, 0], sizes = [2, 1, 256], strides = [1, 1, 1]} : vector<2x2x256xf32> to vector<2x1x256xf32>
    %10 = vector.broadcast %4 : vector<1x19x1xf32> to vector<2x19x256xf32>
    %11 = vector.broadcast %9 : vector<2x1x256xf32> to vector<2x19x256xf32>
    %12 = arith.mulf %10, %11 : vector<2x19x256xf32>
    %13 = vector.extract_strided_slice %1 {offsets = [0, 1, 0], sizes = [2, 1, 256], strides = [1, 1, 1]} : vector<2x2x256xf32> to vector<2x1x256xf32>
    %14 = vector.broadcast %6 : vector<1x19x1xf32> to vector<2x19x256xf32>
    %15 = vector.broadcast %13 : vector<2x1x256xf32> to vector<2x19x256xf32>
    %16 = arith.mulf %14, %15 : vector<2x19x256xf32>
    %17 = arith.addf %12, %16 : vector<2x19x256xf32>
    %18 = vector.broadcast %8 : vector<1x19x1xf32> to vector<2x19x256xf32>
    %19 = arith.addf %17, %18 : vector<2x19x256xf32>
    %cst = arith.constant dense<0xFF800000> : vector<2x256xf32>
    %20 = vector.multi_reduction <maximumf>, %19, %cst [1] : vector<2x19x256xf32> to vector<2x256xf32>
    %21 = vector.shape_cast %20 : vector<2x256xf32> to vector<2x1x256xf32>
    %22 = vector.broadcast %21 : vector<2x1x256xf32> to vector<2x19x256xf32>
    %23 = arith.subf %19, %22 : vector<2x19x256xf32>
    %24 = math.exp %23 : vector<2x19x256xf32>
    %cst_7 = arith.constant dense<0.000000e+00> : vector<2x256xf32>
    %25 = vector.multi_reduction <add>, %24, %cst_7 [1] : vector<2x19x256xf32> to vector<2x256xf32>
    %26 = vector.shape_cast %25 : vector<2x256xf32> to vector<2x1x256xf32>
    %cst_8 = arith.constant 1.000000e+00 : f32
    %27 = vector.broadcast %cst_8 : f32 to vector<2x1x256xf32>
    %28 = arith.divf %27, %26 : vector<2x1x256xf32>
    %29 = vector.broadcast %28 : vector<2x1x256xf32> to vector<2x19x256xf32>
    %30 = arith.mulf %24, %29 : vector<2x19x256xf32>
    %31 = arith.addf %0, %30 : vector<2x19x256xf32>
    %cst_9 = arith.constant dense<0xFF800000> : vector<2x256xf32>
    %32 = vector.multi_reduction <maximumf>, %31, %cst_9 [1] : vector<2x19x256xf32> to vector<2x256xf32>
    %33 = vector.shape_cast %32 : vector<2x256xf32> to vector<2x1x256xf32>
    %34 = vector.broadcast %33 : vector<2x1x256xf32> to vector<2x19x256xf32>
    %35 = arith.subf %31, %34 : vector<2x19x256xf32>
    %36 = math.exp %35 : vector<2x19x256xf32>
    %cst_10 = arith.constant dense<0.000000e+00> : vector<2x256xf32>
    %37 = vector.multi_reduction <add>, %36, %cst_10 [1] : vector<2x19x256xf32> to vector<2x256xf32>
    %38 = vector.shape_cast %37 : vector<2x256xf32> to vector<2x1x256xf32>
    %cst_11 = arith.constant 1.000000e+00 : f32
    %39 = vector.broadcast %cst_11 : f32 to vector<2x1x256xf32>
    %40 = arith.divf %39, %38 : vector<2x1x256xf32>
    %41 = vector.broadcast %40 : vector<2x1x256xf32> to vector<2x19x256xf32>
    %42 = arith.mulf %36, %41 : vector<2x19x256xf32>
    %c0_12 = arith.constant 0 : index
    %c0_13 = arith.constant 0 : index
    %c0_14 = arith.constant 0 : index
    %43 = vector.load %arg5[%c0_12, %c0_13, %c0_14] : memref<2x19x256xf32, #tpu.memory_space<vmem>>, vector<2x19x256xf32>
    tpu.vector_store %arg5[%c0_12, %c0_13, %c0_14], %42 {strides = array<i32>} : memref<2x19x256xf32, #tpu.memory_space<vmem>>, vector<2x19x256xf32>,
    return
  }
  func.func @transform_0(%arg0: i32, %arg1: i32) -> (i32, i32, i32) {
    %c0_i32 = arith.constant 0 : i32
    %c0_i32_0 = arith.constant 0 : i32
    return %arg0, %c0_i32, %arg1 : i32, i32, i32
  }
  func.func @transform_1(%arg0: i32, %arg1: i32) -> (i32, i32, i32) {
    %c0_i32 = arith.constant 0 : i32
    %c0_i32_0 = arith.constant 0 : i32
    return %arg0, %c0_i32, %arg1 : i32, i32, i32
  }
  func.func @transform_2(%arg0: i32, %arg1: i32) -> (i32, i32) {
    %c0_i32 = arith.constant 0 : i32
    %c0_i32_0 = arith.constant 0 : i32
    %c0_i32_1 = arith.constant 0 : i32
    return %c0_i32, %c0_i32_0 : i32, i32
  }
  func.func @transform_3(%arg0: i32, %arg1: i32) -> (i32, i32, i32) {
    %c0_i32 = arith.constant 0 : i32
    %c0_i32_0 = arith.constant 0 : i32
    return %arg0, %c0_i32, %arg1 : i32, i32, i32
  }
}

</mosaic_0001>

<bundles_post_ra>
// kernel: tpu_custom_call.1
= control target key start
LH: loop header
LB: loop body
LE: loop exit
PB: predicated region body
PF: predicated region fallthrough
CT: control target
= control target key end

     0   :  { %v548_v0 = vmov 1   ;;  %v549_v1 = vmov 0   ;;  %v550_v5 = vmov 2   ;;  %v48_v6 = vlaneseq  ;;  %s766_s2 = inlined_call_operand.vmem [shape: f32[19,3], index: 2, kind: input, shape index: {}]   ;;  %s767_s1 = inlined_call_operand.vmem [shape: f32[2,2,256], index: 1, kind: input, shape index: {}]   ;;  %s768_s0 = inlined_call_operand.vmem [shape: f32[2,19,256], index: 0, kind: input, shape index: {}]   ;;  %s769_s3 = inlined_call_operand.vmem [shape: f32[2,19,256], index: 3, kind: output, shape index: {}]  }
   0x1   :  { %481 = vset.pattern.permute.xlu1 %v548_v0  ;;  %480 = vset.pattern.permute.xlu0 %v549_v1  ;;  %v28_v2 = vld [vmem:[%s766_s2] sm:$0xff]  ;;  %v29_v3 = vld [vmem:[%s766_s2 + $0x8] sm:$0xff]  ;;  %v30_v4 = vld [vmem:[%s766_s2 + $0x10] sm:$0x7]  ;;  %vm193_vm0 = vcmask 1042432  }
   0x2   :  { %97 = vperm.xlu1 %481, %v28_v2   ;;  %33 = vperm.xlu0 %480, %v28_v2   ;;  %v49_v7 = vshrl.u32 %v48_v6, 7  ;;  %v26_v10 = vld [vmem:[%s767_s1] sm:$0xf]  ;;  %v27_v11 = vld [vmem:[%s767_s1 + $0x4] sm:$0xf] }
   0x4   :  { %v110_v8 = vsub.s32 1, %v49_v7  ;;  %v114_v9 = vsub.s32 3, %v49_v7  ;;  %v50_v12 = vsub.s32 0, %v49_v7  ;;  %v54_v13 = vsub.s32 2, %v49_v7 }
   0x6   :  { %101 = vperm.xlu1 %481, %v29_v3   ;;  %38 = vperm.xlu0 %480, %v29_v3   ;;  %v111_v14 = vrot.slane %v26_v10, %v110_v8  ;;  %v115_v15 = vrot.slane %v26_v10, %v114_v9  ;;  %v119_v16 = vrot.slane %v27_v11, %v110_v8 }
   0x7   :  { %v123_v17 = vrot.slane %v27_v11, %v114_v9  ;;  %v51_v20 = vrot.slane %v26_v10, %v50_v12  ;;  %v55_v21 = vrot.slane %v26_v10, %v54_v13  ;;  %v59_v22 = vrot.slane %v27_v11, %v50_v12 }
   0x8   :  { %v63_v23 = vrot.slane %v27_v11, %v54_v13  ;;  %v131_v24 = vrot.slane %v111_v14, %v110_v8  ;;  %v135_v25 = vrot.slane %v115_v15, %v110_v8  ;;  %v139_v26 = vrot.slane %v119_v16, %v110_v8 }
   0x9   :  { %v143_v27 = vrot.slane %v123_v17, %v110_v8  ;;  %v71_v28 = vrot.slane %v51_v20, %v50_v12  ;;  %v75_v29 = vrot.slane %v55_v21, %v50_v12  ;;  %v79_v30 = vrot.slane %v59_v22, %v50_v12 }
   0xa   :  { %105 = vperm.xlu1 %481, %v30_v4   ;;  %43 = vperm.xlu0 %480, %v30_v4   ;;  %v83_v31 = vrot.slane %v63_v23, %v50_v12 }
   0xe   :  { %483 = vset.pattern.permute.xlu1 %v550_v5  ;;  %482 = vset.pattern.permute.xlu0 %v550_v5 }
   0xf   :  { %173 = vperm.xlu1 %483, %v29_v3   ;;  %169 = vperm.xlu0 %482, %v28_v2  }
  0x13   :  { %177 = vperm.xlu1 %483, %v30_v4  }
  0x81   :  { %v98_v18 = vpop.permute.xlu1 %97  ;;  %v34_v19 = vpop.permute.xlu0 %33 }
  0x82   :  { %v144_v42 = vmul.f32 %v131_v24, %v98_v18  ;;  %v145_v43 = vmul.f32 %v135_v25, %v98_v18  ;;  %v150_v44 = vmul.f32 %v139_v26, %v98_v18  ;;  %v151_v45 = vmul.f32 %v143_v27, %v98_v18 }
  0x83   :  { %v84_v48 = vmul.f32 %v71_v28, %v34_v19  ;;  %v85_v49 = vmul.f32 %v75_v29, %v34_v19  ;;  %v90_v50 = vmul.f32 %v79_v30, %v34_v19  ;;  %v91_v51 = vmul.f32 %v83_v31, %v34_v19 }
  0x85   :  { %v102_v32 = vpop.permute.xlu1 %101  ;;  %v39_v33 = vpop.permute.xlu0 %38  ;;  %v156_v2 = vadd.f32 %v144_v42, %v84_v48  ;;  %v157_v3 = vadd.f32 %v145_v43, %v85_v49  ;;  %v162_v4 = vadd.f32 %v150_v44, %v90_v50  ;;  %v163_v5 = vadd.f32 %v151_v45, %v91_v51 }
  0x86   :  { %v146_v34 = vmul.f32 %v131_v24, %v102_v32  ;;  %v147_v35 = vmul.f32 %v135_v25, %v102_v32  ;;  %v152_v36 = vmul.f32 %v139_v26, %v102_v32  ;;  %v153_v37 = vmul.f32 %v143_v27, %v102_v32 }
  0x87   :  { %v86_v38 = vmul.f32 %v71_v28, %v39_v33  ;;  %v87_v39 = vmul.f32 %v75_v29, %v39_v33  ;;  %v92_v40 = vmul.f32 %v79_v30, %v39_v33  ;;  %v93_v41 = vmul.f32 %v83_v31, %v39_v33 }
  0x89   :  { %v106_v46 = vpop.permute.xlu1 %105  ;;  %v44_v47 = vpop.permute.xlu0 %43  ;;  %v158_v52 = vadd.f32 %v146_v34, %v86_v38  ;;  %v159_v53 = vadd.f32 %v147_v35, %v87_v39  ;;  %v164_v54 = vadd.f32 %v152_v36, %v92_v40  ;;  %v165_v55 = vadd.f32 %v153_v37, %v93_v41 }
  0x8a   :  { %v148_v56 = vmul.f32 %v131_v24, %v106_v46  ;;  %v149_v57 = vmul.f32 %v135_v25, %v106_v46  ;;  %v154_v58 = vmul.f32 %v139_v26, %v106_v46  ;;  %v155_v59 = vmul.f32 %v143_v27, %v106_v46 }
  0x8b   :  { %v88_v60 = vmul.f32 %v71_v28, %v44_v47  ;;  %v89_v61 = vmul.f32 %v75_v29, %v44_v47  ;;  %v94_v62 = vmul.f32 %v79_v30, %v44_v47  ;;  %v95_v63 = vmul.f32 %v83_v31, %v44_v47 }
  0x8d   :  { %v160_v14 = vadd.f32 %v148_v56, %v88_v60  ;;  %v161_v15 = vadd.f32 %v149_v57, %v89_v61  ;;  %v166_v16 = vadd.f32 %v154_v58, %v94_v62  ;;  %v167_v17 = vadd.f32 %v155_v59, %v95_v63 }
  0x8e   :  { %v174_v0 = vpop.permute.xlu1 %173  ;;  %v170_v1 = vpop.permute.xlu0 %169 }
  0x8f   :  { %v586_v6 = vadd.f32 %v174_v0, %v158_v52  ;;  %v588_v7 = vadd.f32 %v174_v0, %v159_v53  ;;  %v590_v8 = vadd.f32 %v174_v0, %v164_v54  ;;  %v592_v9 = vadd.f32 %v174_v0, %v165_v55 }
  0x90   :  { %v180_v10 = vadd.f32 %v170_v1, %v156_v2  ;;  %v181_v11 = vadd.f32 %v170_v1, %v157_v3  ;;  %v594_v12 = vadd.f32 %v170_v1, %v162_v4  ;;  %v596_v13 = vadd.f32 %v170_v1, %v163_v5 }
  0x92   :  { %v178_v18 = vpop.permute.xlu1 %177  ;;  %v192_v23 = vmax.f32 %v180_v10, %v586_v6  ;;  %v202_v24 = vmax.f32 %v181_v11, %v588_v7  ;;  %v211_v25 = vmax.f32 %v594_v12, %v590_v8  ;;  %v220_v26 = vmax.f32 %v596_v13, %v592_v9 }
  0x93   :  { %v184_v19 = vadd.f32 %v178_v18, %v160_v14  ;;  %v185_v20 = vadd.f32 %v178_v18, %v161_v15  ;;  %v598_v21 = vadd.f32 %v178_v18, %v166_v16  ;;  %v600_v22 = vadd.f32 %v178_v18, %v167_v17 }
  0x95   :  { %v194_v27 = vsel %vm193_vm0, %v184_v19, -inf  ;;  %v203_v28 = vsel %vm193_vm0, %v185_v20, -inf  ;;  %v212_v29 = vsel %vm193_vm0, %v598_v21, -inf  ;;  %v221_v30 = vsel %vm193_vm0, %v600_v22, -inf }
  0x96   :  { %v195_v31 = vmax.f32 %v192_v23, %v194_v27  ;;  %v204_v32 = vmax.f32 %v202_v24, %v203_v28  ;;  %v213_v33 = vmax.f32 %v211_v25, %v212_v29  ;;  %v222_v34 = vmax.f32 %v220_v26, %v221_v30 }
  0x98   :  { %v196_v35 = vrot.slane %v195_v31, 4  ;;  %v205_v36 = vrot.slane %v204_v32, 4  ;;  %v214_v37 = vrot.slane %v213_v33, 4  ;;  %v223_v38 = vrot.slane %v222_v34, 4 }
  0x9a   :  { %v197_v39 = vmax.f32 %v195_v31, %v196_v35  ;;  %v206_v40 = vmax.f32 %v204_v32, %v205_v36  ;;  %v215_v41 = vmax.f32 %v213_v33, %v214_v37  ;;  %v224_v42 = vmax.f32 %v222_v34, %v223_v38 }
  0x9c   :  { %v198_v43 = vrot.slane %v197_v39, 2  ;;  %v207_v44 = vrot.slane %v206_v40, 2  ;;  %v216_v45 = vrot.slane %v215_v41, 2  ;;  %v225_v46 = vrot.slane %v224_v42, 2 }
  0x9e   :  { %v199_v47 = vmax.f32 %v197_v39, %v198_v43  ;;  %v208_v48 = vmax.f32 %v206_v40, %v207_v44  ;;  %v217_v49 = vmax.f32 %v215_v41, %v216_v45  ;;  %v226_v50 = vmax.f32 %v224_v42, %v225_v46 }
  0xa0   :  { %v200_v51 = vrot.slane %v199_v47, 1  ;;  %v209_v52 = vrot.slane %v208_v48, 1  ;;  %v218_v53 = vrot.slane %v217_v49, 1  ;;  %v227_v54 = vrot.slane %v226_v50, 1 }
  0xa2   :  { %v201_v55 = vmax.f32 %v199_v47, %v200_v51  ;;  %v210_v56 = vmax.f32 %v208_v48, %v209_v52  ;;  %v219_v57 = vmax.f32 %v217_v49, %v218_v53  ;;  %v228_v58 = vmax.f32 %v226_v50, %v227_v54 }
  0xa4   :  { %v229_v59 = vsub.f32 %v180_v10, %v201_v55  ;;  %v230_v60 = vsub.f32 %v181_v11, %v210_v56  ;;  %v231_v61 = vsub.f32 %v586_v6, %v201_v55  ;;  %v232_v62 = vsub.f32 %v588_v7, %v210_v56 }
  0xa5   :  { %v233_v63 = vsub.f32 %v184_v19, %v201_v55  ;;  %v234_v0 = vsub.f32 %v185_v20, %v210_v56  ;;  %v235_v1 = vsub.f32 %v594_v12, %v219_v57  ;;  %v236_v5 = vsub.f32 %v596_v13, %v228_v58 }
  0xa6   :  { %v241_v2 = vmul.f32 1.442695, %v229_v59  ;;  %v243_v3 = vmul.f32 1.442695, %v230_v60  ;;  %v245_v4 = vmul.f32 1.442695, %v231_v61  ;;  %v237_v15 = vsub.f32 %v590_v8, %v219_v57 }
  0xa7   :  { %v247_v14 = vmul.f32 1.442695, %v232_v62  ;;  %v249_v16 = vmul.f32 1.442695, %v233_v63  ;;  %v238_v10 = vsub.f32 %v592_v9, %v228_v58  ;;  %v251_v6 = vmul.f32 1.442695, %v234_v0 }
  0xa8   :  { %484 = vpow2.f32 %v241_v2  ;;  %v239_v7 = vsub.f32 %v598_v21, %v219_v57  ;;  %v253_v11 = vmul.f32 1.442695, %v235_v1  ;;  %v240_v12 = vsub.f32 %v600_v22, %v228_v58 }
  0xa9   :  { %486 = vpow2.f32 %v243_v3  ;;  %v255_v17 = vmul.f32 1.442695, %v236_v5  ;;  %v257_v18 = vmul.f32 1.442695, %v237_v15  ;;  %v259_v13 = vmul.f32 1.442695, %v238_v10 }
  0xaa   :  { %488 = vpow2.f32 %v245_v4  ;;  %v261_v8 = vmul.f32 1.442695, %v239_v7  ;;  %v263_v19 = vmul.f32 1.442695, %v240_v12  ;;  %v14_v4 = vld [vmem:[%s768_s0] sm:$0xff]  ;;  %v16_v5 = vld [vmem:[%s768_s0 + $0x10] sm:$0xff] }
  0xab   :  { %490 = vpow2.f32 %v247_v14  ;;  %v18_v14 = vld [vmem:[%s768_s0 + $0x20] sm:$0x7]  ;;  %v17_v10 = vld [vmem:[%s768_s0 + $0x18] sm:$0xff] }
  0xac   :  { %492 = vpow2.f32 %v249_v16  ;;  %v15_v16 = vld [vmem:[%s768_s0 + $0x8] sm:$0xff] }
  0xad   :  { %494 = vpow2.f32 %v251_v6  ;;  %v19_v6 = vld [vmem:[%s768_s0 + $0x28] sm:$0x7] }
  0xae   :  { %496 = vpow2.f32 %v253_v11 }
  0xaf   :  { %498 = vpow2.f32 %v255_v17 }
  0xb0   :  { %500 = vpow2.f32 %v257_v18 }
  0xb1   :  { %502 = vpow2.f32 %v259_v13 }
  0xb2   :  { %v622_v9 = vpop.eup %484  ;;  %504 = vpow2.f32 %v261_v8 }
  0xb3   :  { %v624_v20 = vpop.eup %486  ;;  %506 = vpow2.f32 %v263_v19 }
  0xb4   :  { %v489_v21 = vpop.eup %488 }
  0xb5   :  { %v491_v22 = vpop.eup %490  ;;  %v265_v23 = vadd.f32 %v489_v21, %v622_v9 }
  0xb6   :  { %v493_v24 = vpop.eup %492  ;;  %v274_v25 = vadd.f32 %v491_v22, %v624_v20 }
  0xb7   :  { %v495_v26 = vpop.eup %494  ;;  %v266_v27 = vsel %vm193_vm0, %v493_v24, 0.0 }
  0xb8   :  { %v629_v28 = vpop.eup %496  ;;  %v267_v29 = vadd.f32 %v266_v27, %v265_v23  ;;  %v275_v30 = vsel %vm193_vm0, %v495_v26, 0.0 }
  0xb9   :  { %v632_v31 = vpop.eup %498  ;;  %v276_v32 = vadd.f32 %v275_v30, %v274_v25 }
  0xba   :  { %v634_v33 = vpop.eup %500  ;;  %v268_v34 = vrot.slane %v267_v29, 4 }
  0xbb   :  { %v636_v35 = vpop.eup %502  ;;  %v277_v36 = vrot.slane %v276_v32, 4  ;;  %v283_v37 = vadd.f32 %v634_v33, %v629_v28 }
  0xbc   :  { %v640_v38 = vpop.eup %504  ;;  %v269_v39 = vadd.f32 %v268_v34, %v267_v29  ;;  %v292_v40 = vadd.f32 %v636_v35, %v632_v31 }
  0xbd   :  { %v644_v41 = vpop.eup %506  ;;  %v278_v42 = vadd.f32 %v277_v36, %v276_v32  ;;  %v284_v43 = vsel %vm193_vm0, %v640_v38, 0.0  ;;  %v21_v36 = vld [vmem:[%s768_s0 + $0x38] sm:$0xff] }
  0xbe   :  { %v270_v44 = vrot.slane %v269_v39, 2  ;;  %v285_v45 = vadd.f32 %v284_v43, %v283_v37  ;;  %v293_v46 = vsel %vm193_vm0, %v644_v41, 0.0  ;;  %v23_v37 = vld [vmem:[%s768_s0 + $0x48] sm:$0xff] }
  0xbf   :  { %v279_v47 = vrot.slane %v278_v42, 2  ;;  %v294_v48 = vadd.f32 %v293_v46, %v292_v40 }
  0xc0   :  { %v271_v49 = vadd.f32 %v270_v44, %v269_v39  ;;  %v286_v50 = vrot.slane %v285_v45, 4  ;;  %v25_v39 = vld [vmem:[%s768_s0 + $0x58] sm:$0x7] }
  0xc1   :  { %v280_v51 = vadd.f32 %v279_v47, %v278_v42  ;;  %v295_v52 = vrot.slane %v294_v48, 4 }
  0xc2   :  { %v272_v53 = vrot.slane %v271_v49, 1  ;;  %v287_v54 = vadd.f32 %v286_v50, %v285_v45 }
  0xc3   :  { %v281_v55 = vrot.slane %v280_v51, 1  ;;  %v296_v56 = vadd.f32 %v295_v52, %v294_v48 }
  0xc4   :  { %v273_v57 = vadd.f32 %v272_v53, %v271_v49  ;;  %v288_v58 = vrot.slane %v287_v54, 2 }
  0xc5   :  { %v282_v59 = vadd.f32 %v281_v55, %v280_v51  ;;  %v297_v60 = vrot.slane %v296_v56, 2 }
  0xc6   :  { %v289_v61 = vadd.f32 %v288_v58, %v287_v54  ;;  %508 = vrcp.f32 %v273_v57 }
  0xc7   :  { %v298_v62 = vadd.f32 %v297_v60, %v296_v56  ;;  %510 = vrcp.f32 %v282_v59 }
  0xc8   :  { %v290_v63 = vrot.slane %v289_v61, 1 }
  0xc9   :  { %v299_v0 = vrot.slane %v298_v62, 1 }
  0xca   :  { %v291_v1 = vadd.f32 %v290_v63, %v289_v61 }
  0xcb   :  { %v300_v2 = vadd.f32 %v299_v0, %v298_v62 }
  0xcc   :  { %512 = vrcp.f32 %v291_v1 }
  0xcd   :  { %514 = vrcp.f32 %v300_v2 }
  0xd0   :  { %v509_v3 = vpop.eup %508 }
  0xd1   :  { %v511_v15 = vpop.eup %510  ;;  %v309_v7 = vmul.f32 %v509_v3, %v622_v9  ;;  %v311_v11 = vmul.f32 %v509_v3, %v489_v21  ;;  %v313_v12 = vmul.f32 %v509_v3, %v493_v24  ;;  %v22_v24 = vld [vmem:[%s768_s0 + $0x40] sm:$0xff] }
  0xd2   :  { %v310_v17 = vmul.f32 %v511_v15, %v624_v20  ;;  %v312_v18 = vmul.f32 %v511_v15, %v491_v22  ;;  %v314_v13 = vmul.f32 %v511_v15, %v495_v26  ;;  %v20_v22 = vld [vmem:[%s768_s0 + $0x30] sm:$0xff] }
  0xd3   :  { %v670_v8 = vadd.f32 %v309_v7, %v14_v4  ;;  %v672_v19 = vadd.f32 %v311_v11, %v16_v5  ;;  %v674_v23 = vadd.f32 %v313_v12, %v18_v14  ;;  %v24_v26 = vld [vmem:[%s768_s0 + $0x50] sm:$0x7] }
  0xd4   :  { %v676_v25 = vadd.f32 %v310_v17, %v15_v16  ;;  %v678_v27 = vadd.f32 %v312_v18, %v17_v10  ;;  %v680_v29 = vadd.f32 %v314_v13, %v19_v6 }
  0xd5   :  { %v333_v9 = vmax.f32 %v670_v8, %v672_v19  ;;  %v334_v20 = vsel %vm193_vm0, %v674_v23, -inf }
  0xd6   :  { %v513_v21 = vpop.eup %512  ;;  %v342_v30 = vmax.f32 %v676_v25, %v678_v27  ;;  %v343_v32 = vsel %vm193_vm0, %v680_v29, -inf }
  0xd7   :  { %v515_v34 = vpop.eup %514  ;;  %v315_v40 = vmul.f32 %v513_v21, %v629_v28  ;;  %v317_v42 = vmul.f32 %v513_v21, %v634_v33  ;;  %v319_v43 = vmul.f32 %v513_v21, %v640_v38  ;;  %v335_v44 = vmax.f32 %v333_v9, %v334_v20 }
  0xd8   :  { %v316_v45 = vmul.f32 %v515_v34, %v632_v31  ;;  %v318_v46 = vmul.f32 %v515_v34, %v636_v35  ;;  %v320_v47 = vmul.f32 %v515_v34, %v644_v41  ;;  %v344_v48 = vmax.f32 %v342_v30, %v343_v32 }
  0xd9   :  { %v327_v49 = vadd.f32 %v315_v40, %v20_v22  ;;  %v329_v50 = vadd.f32 %v317_v42, %v22_v24  ;;  %v714_v51 = vadd.f32 %v319_v43, %v24_v26  ;;  %v336_v52 = vrot.slane %v335_v44, 4 }
  0xda   :  { %v328_v53 = vadd.f32 %v316_v45, %v21_v36  ;;  %v330_v54 = vadd.f32 %v318_v46, %v23_v37  ;;  %v332_v28 = vadd.f32 %v320_v47, %v25_v39  ;;  %v345_v55 = vrot.slane %v344_v48, 4 }
  0xdb   :  { %v337_v33 = vmax.f32 %v335_v44, %v336_v52  ;;  %v351_v56 = vmax.f32 %v327_v49, %v329_v50  ;;  %v352_v38 = vsel %vm193_vm0, %v714_v51, -inf }
  0xdc   :  { %v346_v31 = vmax.f32 %v344_v48, %v345_v55  ;;  %v360_v57 = vmax.f32 %v328_v53, %v330_v54  ;;  %v361_v35 = vsel %vm193_vm0, %v332_v28, -inf }
  0xdd   :  { %v338_v41 = vrot.slane %v337_v33, 2  ;;  %v353_v58 = vmax.f32 %v351_v56, %v352_v38 }
  0xde   :  { %v347_v59 = vrot.slane %v346_v31, 2  ;;  %v362_v60 = vmax.f32 %v360_v57, %v361_v35 }
  0xdf   :  { %v339_v61 = vmax.f32 %v337_v33, %v338_v41  ;;  %v354_v62 = vrot.slane %v353_v58, 4 }
  0xe0   :  { %v348_v63 = vmax.f32 %v346_v31, %v347_v59  ;;  %v363_v0 = vrot.slane %v362_v60, 4 }
  0xe1   :  { %v340_v1 = vrot.slane %v339_v61, 1  ;;  %v355_v2 = vmax.f32 %v353_v58, %v354_v62 }
  0xe2   :  { %v349_v3 = vrot.slane %v348_v63, 1  ;;  %v364_v4 = vmax.f32 %v362_v60, %v363_v0 }
  0xe3   :  { %v341_v5 = vmax.f32 %v339_v61, %v340_v1  ;;  %v356_v14 = vrot.slane %v355_v2, 2 }
  0xe4   :  { %v350_v15 = vmax.f32 %v348_v63, %v349_v3  ;;  %v365_v16 = vrot.slane %v364_v4, 2 }
  0xe5   :  { %v357_v10 = vmax.f32 %v355_v2, %v356_v14  ;;  %v369_v6 = vsub.f32 %v670_v8, %v341_v5  ;;  %v371_v7 = vsub.f32 %v672_v19, %v341_v5  ;;  %v373_v11 = vsub.f32 %v674_v23, %v341_v5 }
  0xe6   :  { %v366_v12 = vmax.f32 %v364_v4, %v365_v16  ;;  %v370_v17 = vsub.f32 %v676_v25, %v350_v15  ;;  %v372_v18 = vsub.f32 %v678_v27, %v350_v15  ;;  %v374_v13 = vsub.f32 %v680_v29, %v350_v15 }
  0xe7   :  { %v358_v9 = vrot.slane %v357_v10, 1  ;;  %v381_v20 = vmul.f32 1.442695, %v369_v6  ;;  %v385_v21 = vmul.f32 1.442695, %v371_v7 }
  0xe8   :  { %v367_v22 = vrot.slane %v366_v12, 1  ;;  %v383_v24 = vmul.f32 1.442695, %v370_v17  ;;  %v387_v26 = vmul.f32 1.442695, %v372_v18 }
  0xe9   :  { %v359_v30 = vmax.f32 %v357_v10, %v358_v9  ;;  %516 = vpow2.f32 %v381_v20  ;;  %v389_v8 = vmul.f32 1.442695, %v373_v11  ;;  %v391_v19 = vmul.f32 1.442695, %v374_v13 }
  0xea   :  { %v368_v32 = vmax.f32 %v366_v12, %v367_v22  ;;  %518 = vpow2.f32 %v383_v24 }
  0xeb   :  { %v375_v23 = vsub.f32 %v327_v49, %v359_v30  ;;  %v377_v34 = vsub.f32 %v329_v50, %v359_v30  ;;  %v379_v25 = vsub.f32 %v714_v51, %v359_v30  ;;  %520 = vpow2.f32 %v385_v21 }
  0xec   :  { %v376_v27 = vsub.f32 %v328_v53, %v368_v32  ;;  %v378_v36 = vsub.f32 %v330_v54, %v368_v32  ;;  %v380_v29 = vsub.f32 %v332_v28, %v368_v32  ;;  %522 = vpow2.f32 %v387_v26 }
  0xed   :  { %524 = vpow2.f32 %v389_v8  ;;  %v393_v37 = vmul.f32 1.442695, %v375_v23  ;;  %v397_v39 = vmul.f32 1.442695, %v377_v34  ;;  %v401_v43 = vmul.f32 1.442695, %v379_v25 }
  0xee   :  { %526 = vpow2.f32 %v391_v19  ;;  %v395_v40 = vmul.f32 1.442695, %v376_v27  ;;  %v399_v42 = vmul.f32 1.442695, %v378_v36  ;;  %v403_v44 = vmul.f32 1.442695, %v380_v29 }
  0xef   :  { %528 = vpow2.f32 %v393_v37 }
  0xf0   :  { %530 = vpow2.f32 %v395_v40 }
  0xf1   :  { %532 = vpow2.f32 %v397_v39 }
  0xf2   :  { %534 = vpow2.f32 %v399_v42 }
  0xf3   :  { %v517_v45 = vpop.eup %516  ;;  %536 = vpow2.f32 %v401_v43 }
  0xf4   :  { %v519_v46 = vpop.eup %518  ;;  %538 = vpow2.f32 %v403_v44 }
  0xf5   :  { %v521_v47 = vpop.eup %520 }
  0xf6   :  { %v523_v48 = vpop.eup %522  ;;  %v405_v49 = vadd.f32 %v521_v47, %v517_v45 }
  0xf7   :  { %v525_v50 = vpop.eup %524  ;;  %v414_v51 = vadd.f32 %v523_v48, %v519_v46 }
  0xf8   :  { %v527_v52 = vpop.eup %526  ;;  %v406_v53 = vsel %vm193_vm0, %v525_v50, 0.0 }
  0xf9   :  { %v529_v54 = vpop.eup %528  ;;  %v407_v28 = vadd.f32 %v406_v53, %v405_v49  ;;  %v415_v55 = vsel %vm193_vm0, %v527_v52, 0.0 }
  0xfa   :  { %v531_v33 = vpop.eup %530  ;;  %v416_v56 = vadd.f32 %v415_v55, %v414_v51 }
  0xfb   :  { %v533_v38 = vpop.eup %532  ;;  %v408_v31 = vrot.slane %v407_v28, 4 }
  0xfc   :  { %v535_v57 = vpop.eup %534  ;;  %v417_v35 = vrot.slane %v416_v56, 4  ;;  %v423_v41 = vadd.f32 %v533_v38, %v529_v54 }
  0xfd   :  { %v537_v58 = vpop.eup %536  ;;  %v409_v59 = vadd.f32 %v408_v31, %v407_v28  ;;  %v432_v60 = vadd.f32 %v535_v57, %v531_v33 }
  0xfe   :  { %v539_v61 = vpop.eup %538  ;;  %v418_v62 = vadd.f32 %v417_v35, %v416_v56  ;;  %v424_v63 = vsel %vm193_vm0, %v537_v58, 0.0 }
  0xff   :  { %v410_v0 = vrot.slane %v409_v59, 2  ;;  %v425_v1 = vadd.f32 %v424_v63, %v423_v41  ;;  %v433_v2 = vsel %vm193_vm0, %v539_v61, 0.0 }
 0x100   :  { %v419_v3 = vrot.slane %v418_v62, 2  ;;  %v434_v4 = vadd.f32 %v433_v2, %v432_v60 }
 0x101   :  { %v411_v5 = vadd.f32 %v410_v0, %v409_v59  ;;  %v426_v14 = vrot.slane %v425_v1, 4 }
 0x102   :  { %v420_v15 = vadd.f32 %v419_v3, %v418_v62  ;;  %v435_v16 = vrot.slane %v434_v4, 4 }
 0x103   :  { %v412_v10 = vrot.slane %v411_v5, 1  ;;  %v427_v6 = vadd.f32 %v426_v14, %v425_v1 }
 0x104   :  { %v421_v7 = vrot.slane %v420_v15, 1  ;;  %v436_v11 = vadd.f32 %v435_v16, %v434_v4 }
 0x105   :  { %v413_v12 = vadd.f32 %v412_v10, %v411_v5  ;;  %v428_v17 = vrot.slane %v427_v6, 2 }
 0x106   :  { %v422_v18 = vadd.f32 %v421_v7, %v420_v15  ;;  %v437_v13 = vrot.slane %v436_v11, 2 }
 0x107   :  { %v429_v9 = vadd.f32 %v428_v17, %v427_v6  ;;  %540 = vrcp.f32 %v413_v12 }
 0x108   :  { %v438_v20 = vadd.f32 %v437_v13, %v436_v11  ;;  %542 = vrcp.f32 %v422_v18 }
 0x109   :  { %v430_v21 = vrot.slane %v429_v9, 1 }
 0x10a   :  { %v439_v22 = vrot.slane %v438_v20, 1 }
 0x10b   :  { %v431_v24 = vadd.f32 %v430_v21, %v429_v9 }
 0x10c   :  { %v440_v26 = vadd.f32 %v439_v22, %v438_v20 }
 0x10d   :  { %544 = vrcp.f32 %v431_v24 }
 0x10e   :  { %546 = vrcp.f32 %v440_v26 }
 0x111   :  { %v541_v30 = vpop.eup %540 }
 0x112   :  { %v543_v8 = vpop.eup %542  ;;  %v449_v32 = vmul.f32 %v541_v30, %v517_v45  ;;  %v451_v19 = vmul.f32 %v541_v30, %v521_v47  ;;  %v453_v23 = vmul.f32 %v541_v30, %v525_v50 }
 0x113   :  { %v450_v34 = vmul.f32 %v543_v8, %v519_v46  ;;  %v452_v25 = vmul.f32 %v543_v8, %v523_v48  ;;  %v454_v27 = vmul.f32 %v543_v8, %v527_v52 }
 0x114   :  { %461 = vst [vmem:[%s769_s3] sm:$0xff] %v449_v32  ;;  %463 = vst [vmem:[%s769_s3 + $0x10] sm:$0xff] %v451_v19 }
 0x115   :  { %465 = vst [vmem:[%s769_s3 + $0x20] sm:$0x7] %v453_v23  ;;  %462 = vst [vmem:[%s769_s3 + $0x8] sm:$0xff] %v450_v34 }
 0x116   :  { %464 = vst [vmem:[%s769_s3 + $0x18] sm:$0xff] %v452_v25  ;;  %466 = vst [vmem:[%s769_s3 + $0x28] sm:$0x7] %v454_v27 }
 0x117   :  { %v545_v36 = vpop.eup %544 }
 0x118   :  { %v547_v29 = vpop.eup %546  ;;  %v455_v37 = vmul.f32 %v545_v36, %v529_v54  ;;  %v457_v39 = vmul.f32 %v545_v36, %v533_v38  ;;  %v459_v40 = vmul.f32 %v545_v36, %v537_v58 }
 0x119   :  { %v456_v42 = vmul.f32 %v547_v29, %v531_v33  ;;  %v458_v43 = vmul.f32 %v547_v29, %v535_v57  ;;  %v460_v44 = vmul.f32 %v547_v29, %v539_v61 }
 0x11a   :  { %467 = vst [vmem:[%s769_s3 + $0x30] sm:$0xff] %v455_v37  ;;  %469 = vst [vmem:[%s769_s3 + $0x40] sm:$0xff] %v457_v39 }
 0x11b   :  { %471 = vst [vmem:[%s769_s3 + $0x50] sm:$0x7] %v459_v40  ;;  %468 = vst [vmem:[%s769_s3 + $0x38] sm:$0xff] %v456_v42 }
 0x11c   :  { %470 = vst [vmem:[%s769_s3 + $0x48] sm:$0xff] %v458_v43  ;;  %472 = vst [vmem:[%s769_s3 + $0x58] sm:$0x7] %v460_v44 }

</bundles_post_ra>
